<compile_context>
chip_gen: v6e
topology: v6e:2x2x1
jax: 0.10.0
libtpu: 0.0.40
codegen_flags: <defaults>
</compile_context>

<pallas_src>
import math
from functools import partial

import jax
import jax.numpy as jnp
from jax.experimental import pallas as pl
from jax.experimental.pallas import tpu as pltpu

LN_EPS = 1e-5


def _round_up(x, m):
    return ((x + m - 1) // m) * m


# ----------------------------------------------------------------------------
# Fused (LN?) -> (gate?) -> matmul -> bias -> (act?) kernel
# ----------------------------------------------------------------------------
def _linear_kernel(*refs, act, eps, has_ln, has_gate):
    refs = list(refs)
    o_ref = refs.pop()
    x_ref = refs.pop(0)
    z_ref = refs.pop(0) if has_gate else None
    w_ref = refs.pop(0)
    b_ref = refs.pop(0)
    g_ref = refs.pop(0) if has_ln else None
    be_ref = refs.pop(0) if has_ln else None

    xb = x_ref[...]
    if has_ln or has_gate:
        x = xb.astype(jnp.float32)
        if has_ln:
            mu = jnp.mean(x, axis=-1, keepdims=True)
            xc = x - mu
            var = jnp.mean(xc * xc, axis=-1, keepdims=True)
            x = xc * jax.lax.rsqrt(var + eps) * g_ref[...] + be_ref[...]
        if has_gate:
            z = z_ref[...].astype(jnp.float32)
            x = x * (z * jax.nn.sigmoid(z))
        xb = x.astype(jnp.bfloat16)

    acc = jnp.dot(xb, w_ref[...], preferred_element_type=jnp.float32)
    acc = acc + b_ref[...]
    if act == "gelu":
        acc = jax.nn.gelu(acc, approximate=False)     # exact GELU like nn.GELU()
    elif act == "silu":
        acc = acc * jax.nn.sigmoid(acc)
    o_ref[...] = acc.astype(o_ref.dtype)


def linear(x, w, b=None, act="none", ln=None, gate=None, tm=256):
    """y = act((ln(x) [* silu(gate)]) @ w + b).  x: (..., K), w: (K, N)."""
    orig = x.shape
    K = orig[-1]
    N = w.shape[-1]
    x2 = x.reshape(-1, K)
    M = x2.shape[0]

    tm = min(tm, _round_up(M, 8))          # adaptive row tile (no padding when M%8==0)
    Mp = _round_up(M, tm)
    tn = 256 if (N > 512 and N % 256 == 0) else N   # tile N only when weight is large

    has_ln = ln is not None
    has_gate = gate is not None
    # bf16 operands at the boundary when no f32 prologue is needed
    x2 = x2.astype(jnp.float32 if (has_ln or has_gate) else jnp.bfloat16)
    if Mp != M:
        x2 = jnp.pad(x2, ((0, Mp - M), (0, 0)))
    if b is None:
        b = jnp.zeros((N,), jnp.float32)

    inputs = [x2]
    in_specs = [pl.BlockSpec((tm, K), lambda i, j: (i, 0))]
    if has_gate:
        z2 = gate.reshape(-1, K).astype(jnp.float32)
        if Mp != M:
            z2 = jnp.pad(z2, ((0, Mp - M), (0, 0)))
        inputs.append(z2)
        in_specs.append(pl.BlockSpec((tm, K), lambda i, j: (i, 0)))
    inputs += [w.astype(jnp.bfloat16), b.reshape(1, N).astype(jnp.float32)]
    in_specs += [pl.BlockSpec((K, tn), lambda i, j: (0, j)),
                 pl.BlockSpec((1, tn), lambda i, j: (0, j))]
    if has_ln:
        g, be, eps = ln
        inputs += [g.reshape(1, K).astype(jnp.float32),
                   be.reshape(1, K).astype(jnp.float32)]
        in_specs += [pl.BlockSpec((1, K), lambda i, j: (0, 0)),
                     pl.BlockSpec((1, K), lambda i, j: (0, 0))]
    else:
        eps = 0.0

    cost = pl.CostEstimate(
        flops=2 * Mp * K * N, transcendentals=0,
        bytes_accessed=int(x2.size * x2.dtype.itemsize) + 2 * K * N + 4 * Mp * N)

    out = pl.pallas_call(
        partial(_linear_kernel, act=act, eps=eps, has_ln=has_ln, has_gate=has_gate),
        out_shape=jax.ShapeDtypeStruct((Mp, N), jnp.float32),
        grid=(Mp // tm, N // tn),
        in_specs=in_specs,
        out_specs=pl.BlockSpec((tm, tn), lambda i, j: (i, j)),
        compiler_params=pltpu.CompilerParams(
            dimension_semantics=("parallel", "parallel")),
        cost_estimate=cost,
    )(*inputs)
    return out[:M].reshape(orig[:-1] + (N,))


# ----------------------------------------------------------------------------
# Standalone LayerNorm (stem / downsample / outnorm)
# ----------------------------------------------------------------------------
def _ln_kernel(x_ref, g_ref, b_ref, o_ref, *, eps):
    x = x_ref[...].astype(jnp.float32)
    mu = jnp.mean(x, axis=-1, keepdims=True)
    xc = x - mu
    var = jnp.mean(xc * xc, axis=-1, keepdims=True)
    y = xc * jax.lax.rsqrt(var + eps) * g_ref[...] + b_ref[...]
    o_ref[...] = y.astype(o_ref.dtype)


def layernorm(x, g, b, eps=LN_EPS, tm=512):
    orig = x.shape
    C = orig[-1]
    x2 = x.reshape(-1, C).astype(jnp.float32)
    M = x2.shape[0]
    tm = min(tm, _round_up(M, 8))
    Mp = _round_up(M, tm)
    if Mp != M:
        x2 = jnp.pad(x2, ((0, Mp - M), (0, 0)))
    out = pl.pallas_call(
        partial(_ln_kernel, eps=eps),
        out_shape=jax.ShapeDtypeStruct((Mp, C), jnp.float32),
        grid=(Mp // tm,),
        in_specs=[pl.BlockSpec((tm, C), lambda i: (i, 0)),
                  pl.BlockSpec((1, C), lambda i: (0, 0)),
                  pl.BlockSpec((1, C), lambda i: (0, 0))],
        out_specs=pl.BlockSpec((tm, C), lambda i: (i, 0)),
        compiler_params=pltpu.CompilerParams(dimension_semantics=("parallel",)),
    )(x2, g.reshape(1, C).astype(jnp.float32), b.reshape(1, C).astype(jnp.float32))
    return out[:M].reshape(orig)


# ----------------------------------------------------------------------------
# Depthwise conv (+ optional SiLU, optional fused residual add), NHWC
# ----------------------------------------------------------------------------
def _dwconv_kernel(x_ref, w_ref, b_ref, o_ref, *, kh, kw, dil, act, residual):
    H, W = o_ref.shape[1], o_ref.shape[2]
    w = w_ref[...].astype(jnp.float32)               # (kh, kw, C)
    acc = jnp.zeros(o_ref.shape[1:], jnp.float32)    # (H, W, C)
    for i in range(kh):
        for j in range(kw):
            patch = x_ref[0, i * dil:i * dil + H, j * dil:j * dil + W, :]
            acc = acc + patch.astype(jnp.float32) * w[i, j]
    acc = acc + b_ref[...]
    if act == "silu":
        acc = acc * jax.nn.sigmoid(acc)
    if residual:
        ph, pw = dil * (kh // 2), dil * (kw // 2)
        acc = acc + x_ref[0, ph:ph + H, pw:pw + W, :].astype(jnp.float32)
    o_ref[0] = acc.astype(o_ref.dtype)


def dwconv(x, w, b=None, dil=1, pad_mode="zero", act="none", residual=False):
    """Depthwise conv, NHWC.  w: (kh, kw, C).  'same' output size."""
    B, H, W, C = x.shape
    kh, kw, _ = w.shape
    ph, pw = dil * (kh // 2), dil * (kw // 2)
    mode = "edge" if pad_mode == "replicate" else "constant"
    xp = jnp.pad(x.astype(jnp.bfloat16), ((0, 0), (ph, ph), (pw, pw), (0, 0)), mode=mode)
    Hp, Wp = H + 2 * ph, W + 2 * pw
    if b is None:
        b = jnp.zeros((C,), jnp.float32)
    return pl.pallas_call(
        partial(_dwconv_kernel, kh=kh, kw=kw, dil=dil, act=act, residual=residual),
        out_shape=jax.ShapeDtypeStruct((B, H, W, C), jnp.float32),
        grid=(B,),
        in_specs=[pl.BlockSpec((1, Hp, Wp, C), lambda bb: (bb, 0, 0, 0)),
                  pl.BlockSpec((kh, kw, C), lambda bb: (0, 0, 0)),
                  pl.BlockSpec((1, C), lambda bb: (0, 0))],
        out_specs=pl.BlockSpec((1, H, W, C), lambda bb: (bb, 0, 0, 0)),
        compiler_params=pltpu.CompilerParams(dimension_semantics=("parallel",)),
    )(xp, w.astype(jnp.float32), b.reshape(1, C).astype(jnp.float32))


# ----------------------------------------------------------------------------
# StateFusion: three dilated (1/3/5) 3x3 depthwise convs fused into one kernel
# ----------------------------------------------------------------------------
def _statefusion_kernel(x_ref, w_ref, o_ref, *, dils, halo):
    H, W = o_ref.shape[1], o_ref.shape[2]
    w = w_ref[...].astype(jnp.float32)               # (len(dils)*9, C)
    acc = jnp.zeros(o_ref.shape[1:], jnp.float32)
    for ki, d in enumerate(dils):
        for i in range(3):
            for j in range(3):
                r0 = halo - d + i * d
                c0 = halo - d + j * d
                patch = x_ref[0, r0:r0 + H, c0:c0 + W, :].astype(jnp.float32)
                acc = acc + patch * w[ki * 9 + i * 3 + j]
    o_ref[0] = acc.astype(o_ref.dtype)


def statefusion(x, k3, k3_1, k3_2, alpha):
    """alpha[0]*dwconv(d=1) + alpha[1]*dwconv(d=3) + alpha[2]*dwconv(d=5), replicate pad."""
    B, H, W, C = x.shape
    dils = (1, 3, 5)
    halo = max(dils)                                   # kernel 3 -> halo = dil
    xp = jnp.pad(x.astype(jnp.bfloat16),
                 ((0, 0), (halo, halo), (halo, halo), (0, 0)), mode="edge")
    Hp, Wp = H + 2 * halo, W + 2 * halo
    wstack = jnp.stack([k3 * alpha[0], k3_1 * alpha[1], k3_2 * alpha[2]],
                       axis=0).reshape(len(dils) * 9, C).astype(jnp.float32)
    return pl.pallas_call(
        partial(_statefusion_kernel, dils=dils, halo=halo),
        out_shape=jax.ShapeDtypeStruct((B, H, W, C), jnp.float32),
        grid=(B,),
        in_specs=[pl.BlockSpec((1, Hp, Wp, C), lambda bb: (bb, 0, 0, 0)),
                  pl.BlockSpec((len(dils) * 9, C), lambda bb: (0, 0))],
        out_specs=pl.BlockSpec((1, H, W, C), lambda bb: (bb, 0, 0, 0)),
        compiler_params=pltpu.CompilerParams(dimension_semantics=("parallel",)),
    )(xp, wstack)


# ----------------------------------------------------------------------------
# Selective scan (Mamba recurrence, d_state == 1), vectorized transcendentals
# ----------------------------------------------------------------------------
def _scan_kernel(u_ref, dt_ref, A_ref, B_ref, bias_ref, o_ref, dA_ref, dBu_ref):
    Lp, D = u_ref.shape[1], u_ref.shape[2]
    A = A_ref[...]                                     # (1, D)
    bias = bias_ref[...]                               # (1, D)
    # Hoisted / vectorized over the whole (Lp, D) block (full vregs on EUP/VPU).
    dt = jax.nn.softplus(dt_ref[0] + bias)             # (Lp, D)
    dA_ref[...] = jnp.exp(dt * A)                      # (Lp, D)
    dBu_ref[...] = dt * u_ref[0] * B_ref[0]            # (Lp, D) ; B is (Lp, 1)

    CH = 8
    row_ids = jax.lax.broadcasted_iota(jnp.int32, (CH, D), 0)

    def chunk(c, h):
        base = pl.multiple_of(c * CH, CH)
        a = dA_ref[pl.ds(base, CH), :]                 # (CH, D) aligned load
        bb = dBu_ref[pl.ds(base, CH), :]
        out = jnp.zeros((CH, D), jnp.float32)
        for j in range(CH):                            # only 2 VPU ops per step
            h = a[j:j + 1, :] * h + bb[j:j + 1, :]
            out = jnp.where(row_ids == j, h, out)
        o_ref[0, pl.ds(base, CH), :] = out             # sublane-aligned (8, D) store
        return h

    jax.lax.fori_loop(0, Lp // CH, chunk, jnp.zeros((1, D), jnp.float32))


def selective_scan(u, dt, A_t, Bs, dt_bias):
    """u, dt: (B, L, D); A_t: (1, D); Bs: (B, L, 1); dt_bias: (D,) -> h: (B, L, D)."""
    B, L, D = u.shape
    N = A_t.shape[0]
    assert N == 1, "this scan layout (and hs*Cs downstream) requires d_state == 1"
    CH = 8
    Lp = _round_up(L, CH)                              # causal: trailing pad is harmless
    if Lp != L:
        u = jnp.pad(u, ((0, 0), (0, Lp - L), (0, 0)))
        dt = jnp.pad(dt, ((0, 0), (0, Lp - L), (0, 0)))
        Bs = jnp.pad(Bs, ((0, 0), (0, Lp - L), (0, 0)))
    out = pl.pallas_call(
        _scan_kernel,
        out_shape=jax.ShapeDtypeStruct((B, Lp, D), jnp.float32),
        grid=(B,),
        in_specs=[pl.BlockSpec((1, Lp, D), lambda bb: (bb, 0, 0)),
                  pl.BlockSpec((1, Lp, D), lambda bb: (bb, 0, 0)),
                  pl.BlockSpec((1, D), lambda bb: (0, 0)),
                  pl.BlockSpec((1, Lp, N), lambda bb: (bb, 0, 0)),
                  pl.BlockSpec((1, D), lambda bb: (0, 0))],
        out_specs=pl.BlockSpec((1, Lp, D), lambda bb: (bb, 0, 0)),
        scratch_shapes=[pltpu.VMEM((Lp, D), jnp.float32),
                        pltpu.VMEM((Lp, D), jnp.float32)],
        compiler_params=pltpu.CompilerParams(dimension_semantics=("parallel",)),
    )(u.astype(jnp.float32), dt.astype(jnp.float32), A_t.astype(jnp.float32),
      Bs.astype(jnp.float32), dt_bias.reshape(1, D).astype(jnp.float32))
    return out[:, :L, :]


# ----------------------------------------------------------------------------
# Model (glue in plain JAX; compute in the kernels above)
# ----------------------------------------------------------------------------
def mlp_forward(p, x, ln=None):
    h = linear(x, p["fc1_w"], p["fc1_b"], act="gelu", ln=ln)   # fused ln_2 -> fc1 -> GELU
    return linear(h, p["fc2_w"], p["fc2_b"])


def ssm_forward(p, x, ln):
    """StructureAwareSSM.forward, x: (B, H, W, C) channels-last (pre-ln_1)."""
    B, H, W, C = x.shape
    d_inner = p["in_proj_w"].shape[1] // 2
    dt_rank = p["dt_proj_w"].shape[0]
    d_state = p["A_logs"].shape[1]
    assert d_state == 1, "y = h*Cs (elementwise) is only valid for d_state == 1"

    xz = linear(x, p["in_proj_w"], ln=ln)                      # fused ln_1 -> in_proj
    xq, z = xz[..., :d_inner], xz[..., d_inner:]
    xq = dwconv(xq, p["conv_w"], p["conv_b"], act="silu")      # conv2d + SiLU

    L = H * W
    xs = xq.reshape(B, L, d_inner)
    x_dbl = linear(xs, p["x_proj_w"])                          # (B, L, dt_rank + 2*d_state)
    dts_r = x_dbl[..., :dt_rank]
    Bs = x_dbl[..., dt_rank:dt_rank + d_state]
    Cs = x_dbl[..., dt_rank + d_state:]
    dts = linear(dts_r, p["dt_proj_w"])                        # (B, L, d_inner)

    A = -jnp.exp(p["A_logs"])                                  # (d_inner, 1)
    h = selective_scan(xs, dts, jnp.transpose(A), Bs, p["dt_bias"])   # (B, L, d_inner)
    hmap = h.reshape(B, H, W, d_inner)

    sf = p["sf"]
    hfused = statefusion(hmap, sf["k3"], sf["k3_1"], sf["k3_2"], sf["alpha"])
    hs = hfused.reshape(B, L, d_inner)

    y = hs * Cs + xs * p["Ds"]                                 # (B, L, d_inner)
    y = y.reshape(B, H, W, d_inner)
    # fused out_norm -> *silu(z) gate -> out_proj
    y = linear(y, p["out_proj_w"],
               ln=(p["out_norm_g"], p["out_norm_b"], LN_EPS), gate=z)
    return y


def block_forward(p, x):
    """SpatialMambaBlock.forward, x: (B, H, W, C) channels-last."""
    x = dwconv(x, p["cpe1_w"], p["cpe1_b"], residual=True)     # x + cpe1(x), fused
    t = jnp.transpose(x, (0, 2, 1, 3))                         # == permute(0,3,2,1) on NCHW
    t = ssm_forward(p["ssm"], t, ln=(p["ln1_g"], p["ln1_b"], LN_EPS))
    x = x + jnp.transpose(t, (0, 2, 1, 3))
    x = dwconv(x, p["cpe2_w"], p["cpe2_b"], residual=True)     # x + cpe2(x), fused
    t = jnp.transpose(x, (0, 2, 1, 3))
    t = mlp_forward(p["mlp"], t, ln=(p["ln2_g"], p["ln2_b"], LN_EPS))
    x = x + jnp.transpose(t, (0, 2, 1, 3))
    return x


def downsample_forward(p, x):
    B, H, W, C = x.shape
    x = (x.reshape(B, H // 2, 2, W // 2, 2, C)
           .transpose(0, 1, 3, 2, 4, 5)
           .reshape(B, H // 2, W // 2, 4 * C))
    x = linear(x, p["w"], p["b"])
    x = layernorm(x, p["ln_g"], p["ln_b"])
    return x


def backbone_forward(params, x_nchw, out_indices=(0, 1)):
    x = jnp.transpose(x_nchw, (0, 2, 3, 1)).astype(jnp.float32)   # NCHW -> NHWC
    B, H, W, Cin = x.shape
    ps = params["patch_size"]
    x = (x.reshape(B, H // ps, ps, W // ps, ps, Cin)
           .transpose(0, 1, 3, 2, 4, 5)
           .reshape(B, H // ps, W // ps, ps * ps * Cin))
    x = linear(x, params["stem"]["w"], params["stem"]["b"])
    x = layernorm(x, params["stem"]["ln_g"], params["stem"]["ln_b"])

    outs = []
    for i, layer in enumerate(params["layers"]):
        for blk in layer["blocks"]:
            x = block_forward(blk, x)
        o = x
        x = downsample_forward(layer["downsample"], x) if layer["downsample"] is not None else None
        if i in out_indices:
            on = params["outnorms"][i]
            out = layernorm(o, on["g"], on["b"])
            out = jnp.transpose(out, (0, 3, 1, 2))                # channel_first=False -> NCHW
            outs.append(out)
    return outs


# ----------------------------------------------------------------------------
# Deterministic synthetic parameter init (shapes match the module's __init__)
# ----------------------------------------------------------------------------
def init_params(seed=0, in_chans=3, patch_size=4, dims=(32, 64), depths=(1, 1),
                d_state=1, mlp_ratio=4.0, dt_min=1e-3, dt_max=0.1, dt_init_floor=1e-4):
    key = jax.random.PRNGKey(seed)
    kit = iter(jax.random.split(key, 1024))

    def nrm(shape, std=0.02):
        return std * jax.random.normal(next(kit), shape, jnp.float32)

    def uni(shape, lo, hi):
        return jax.random.uniform(next(kit), shape, jnp.float32, lo, hi)

    params = {"patch_size": patch_size}
    ed = dims[0]
    params["stem"] = dict(w=nrm((patch_size * patch_size * in_chans, ed)),
                          b=jnp.zeros((ed,)), ln_g=jnp.ones((ed,)), ln_b=jnp.zeros((ed,)))

    layers = []
    for li, dim in enumerate(dims):
        blocks = []
        for _ in range(depths[li]):
            d_inner = 2 * dim
            dt_rank = math.ceil(dim / 16)
            dt = jnp.clip(jnp.exp(uni((d_inner,), math.log(dt_min), math.log(dt_max))),
                          dt_init_floor, None)
            inv_dt = dt + jnp.log(-jnp.expm1(-dt))
            dt_std = dt_rank ** -0.5
            ssm = dict(
                in_proj_w=nrm((dim, 2 * d_inner)),
                conv_w=nrm((3, 3, d_inner)), conv_b=jnp.zeros((d_inner,)),
                x_proj_w=nrm((d_inner, dt_rank + 2 * d_state)),
                dt_proj_w=uni((dt_rank, d_inner), -dt_std, dt_std),
                dt_bias=inv_dt,
                A_logs=jnp.log(jnp.tile(jnp.arange(1, d_state + 1, dtype=jnp.float32)[None, :],
                                        (d_inner, 1))),
                Ds=jnp.ones((d_inner,)),
                sf=dict(k3=jnp.ones((3, 3, d_inner)), k3_1=jnp.ones((3, 3, d_inner)),
                        k3_2=jnp.ones((3, 3, d_inner)), alpha=jnp.ones((3,))),
                out_norm_g=jnp.ones((d_inner,)), out_norm_b=jnp.zeros((d_inner,)),
                out_proj_w=nrm((d_inner, dim)),
            )
            hid = int(dim * mlp_ratio)
            blocks.append(dict(
                cpe1_w=nrm((3, 3, dim)), cpe1_b=jnp.zeros((dim,)),
                ln1_g=jnp.ones((dim,)), ln1_b=jnp.zeros((dim,)),
                ssm=ssm,
                cpe2_w=nrm((3, 3, dim)), cpe2_b=jnp.zeros((dim,)),
                ln2_g=jnp.ones((dim,)), ln2_b=jnp.zeros((dim,)),
                mlp=dict(fc1_w=nrm((dim, hid)), fc1_b=jnp.zeros((hid,)),
                         fc2_w=nrm((hid, dim)), fc2_b=jnp.zeros((dim,))),
            ))
        ds = None
        if li < len(dims) - 1:
            ds = dict(w=nrm((4 * dim, 2 * dim)), b=jnp.zeros((2 * dim,)),
                      ln_g=jnp.ones((2 * dim,)), ln_b=jnp.zeros((2 * dim,)))
        layers.append(dict(blocks=blocks, downsample=ds))
    params["layers"] = layers
    params["outnorms"] = [dict(g=jnp.ones((d,)), b=jnp.zeros((d,))) for d in dims]
    return params


if __name__ == "__main__":
    # Small config: img 16x16, patch 4, depths=[1,1], dims=[32,64], d_state=1
    params = init_params(seed=0, in_chans=3, patch_size=4, dims=(32, 64), depths=(1, 1))
    x = jax.random.normal(jax.random.PRNGKey(0), (2, 3, 16, 16), jnp.float32)  # NCHW input
    outs = backbone_forward(params, x, out_indices=(0, 1))
    outs = jax.block_until_ready(outs)
    assert outs[0].shape == (2, 32, 4, 4), outs[0].shape
    assert outs[1].shape == (2, 64, 2, 2), outs[1].shape
    assert all(bool(jnp.all(jnp.isfinite(o))) for o in outs)
    print("KERNEL_OK")
</pallas_src>

<mosaic_0001>
module attributes {stable_mosaic.version = 11 : i64} {
  func.func @_linear_kernel(%arg0: i32, %arg1: i32, %arg2: memref<32x48xbf16, #tpu.memory_space<vmem>>, %arg3: memref<48x32xbf16, #tpu.memory_space<vmem>>, %arg4: memref<1x32xf32, #tpu.memory_space<vmem>>, %arg5: memref<32x32xf32, #tpu.memory_space<vmem>>) attributes {dimension_semantics = [#tpu.dimension_semantics<parallel>, #tpu.dimension_semantics<parallel>], iteration_bounds = array<i64: 1, 1>, scalar_prefetch = 0 : i64, scratch_operands = 0 : i64, tpu.core_type = #tpu.core_type<tc>, window_params = [{transform_indices = @transform_0, window_bounds = array<i64: 32, 48>}, {transform_indices = @transform_1, window_bounds = array<i64: 48, 32>}, {transform_indices = @transform_2, window_bounds = array<i64: 1, 32>}, {transform_indices = @transform_3, window_bounds = array<i64: 32, 32>}]} {
    %c0 = arith.constant 0 : index
    %c0_0 = arith.constant 0 : index
    %0 = vector.load %arg2[%c0, %c0_0] : memref<32x48xbf16, #tpu.memory_space<vmem>>, vector<32x48xbf16>
    %c0_1 = arith.constant 0 : index
    %c0_2 = arith.constant 0 : index
    %1 = vector.load %arg3[%c0_1, %c0_2] : memref<48x32xbf16, #tpu.memory_space<vmem>>, vector<48x32xbf16>
    %cst = arith.constant dense<0.000000e+00> : vector<32x32xf32>
    %2 = tpu.matmul %0, %1, %cst {dimension_numbers = #tpu.dot_dimension_numbers<[1], [0], [0], [1], [0, 0, 1, 1], [], []>} : vector<32x48xbf16>, vector<48x32xbf16>, vector<32x32xf32> -> vector<32x32xf32>
    %c0_3 = arith.constant 0 : index
    %c0_4 = arith.constant 0 : index
    %3 = vector.load %arg4[%c0_3, %c0_4] : memref<1x32xf32, #tpu.memory_space<vmem>>, vector<1x32xf32>
    %4 = vector.broadcast %3 : vector<1x32xf32> to vector<32x32xf32>
    %5 = arith.addf %2, %4 : vector<32x32xf32>
    %c0_5 = arith.constant 0 : index
    %c0_6 = arith.constant 0 : index
    %6 = vector.load %arg5[%c0_5, %c0_6] : memref<32x32xf32, #tpu.memory_space<vmem>>, vector<32x32xf32>
    tpu.vector_store %arg5[%c0_5, %c0_6], %5 {strides = array<i32>} : memref<32x32xf32, #tpu.memory_space<vmem>>, vector<32x32xf32>,
    return
  }
  func.func @transform_0(%arg0: i32, %arg1: i32) -> (i32, i32) {
    %c0_i32 = arith.constant 0 : i32
    %c0_i32_0 = arith.constant 0 : i32
    return %arg0, %c0_i32 : i32, i32
  }
  func.func @transform_1(%arg0: i32, %arg1: i32) -> (i32, i32) {
    %c0_i32 = arith.constant 0 : i32
    %c0_i32_0 = arith.constant 0 : i32
    return %c0_i32, %arg1 : i32, i32
  }
  func.func @transform_2(%arg0: i32, %arg1: i32) -> (i32, i32) {
    %c0_i32 = arith.constant 0 : i32
    %c0_i32_0 = arith.constant 0 : i32
    return %c0_i32, %arg1 : i32, i32
  }
  func.func @transform_3(%arg0: i32, %arg1: i32) -> (i32, i32) {
    %c0_i32 = arith.constant 0 : i32
    return %arg0, %arg1 : i32, i32
  }
}

</mosaic_0001>

<bundles_post_ra>
// kernel: tpu_custom_call.1
= control target key start
LH: loop header
LB: loop body
LE: loop exit
PB: predicated region body
PF: predicated region fallthrough
CT: control target
= control target key end

     0   :  { %vm61_vm0 = vcmask 392192   ;;  %s235_s0 = inlined_call_operand.vmem [shape: bf16[32,48], index: 0, kind: input, shape index: {}]   ;;  %s236_s1 = inlined_call_operand.vmem [shape: bf16[48,32], index: 1, kind: input, shape index: {}]   ;;  %s237_s2 = inlined_call_operand.vmem [shape: f32[1,32], index: 2, kind: input, shape index: {}]   ;;  %s238_s3 = inlined_call_operand.hbm [shape: f32[32,32], index: 3, kind: output, shape index: {}]  }
   0x1   :  { %v164_v0 = vld [vmem:[%s236_s1 + $0x10] sm:$0xff]   ;;  %v165_v1 = vld [vmem:[%s236_s1 + $0x8] sm:$0xff]   ;;  %v167_v2 = vld [vmem:[%s235_s0] sm:$0xff]  }
   0x2   :  { %151 = vmatprep.subr.bf16.mxu0 %v164_v0  ;;  %v166_v3 = vld [vmem:[%s236_s1] sm:$0xff]   ;;  %157 = vmatprep.mubr.msk.bf16.mxu0 %vm61_vm0, %v167_v2 }
   0x3   :  { %152 = vmatpush3.bf16.msra.mxu0 %v164_v0 }
   0x4   :  { %153 = vmatprep.subr.bf16.mxu0 %v165_v1 }
   0x5   :  { %8 = vsyncpa [#allocation3], 0  ;;  %v168_v4 = vld [vmem:[%s235_s0 + $0x8] sm:$0xff]   ;;  %v138_v5 = vld [vmem:[%s237_s2] ss:$0 sm:$0xff]  ;;  %vm117_vm1 = vcmask 261120  }
   0x6   :  { %s191_s1 = smov [#allocation2]  }
   0x7   :  { %154 = vmatpush3.bf16.msra.mxu0 %v165_v1  ;;  %s127_s24 = sshll.u32 %s191_s1, 4  ;;  %s128_s24 = int_to_ptr.vmem [resolvable:$true] %s127_s24 }
   0x8   :  { %155 = vmatprep.subr.bf16.mxu0 %v166_v3  ;;  %s169_s0 = scalar_lea.vmem %s128_s24, 512  ;;  %p174_p1 = scmp.lt.s32.totalorder %s128_s24, %s128_s24 }
   0x9   :  { %p170_p0 = scmp.ne.s32.totalorder %s128_s24, %s169_s0  ;;  %p175_p2 = scmp.lt.s32.totalorder %s169_s0, %s169_s0 }
   0xb   :  { %156 = vmatpush3.bf16.msra.mxu0 %v166_v3  ;;  %p176_p3 = por %p175_p2, %p174_p1 }
   0xd   :  { %p177_p4 = pnand %p176_p3, %p170_p0 }
   0xe   :  { %158 = vmatmul.mubr.msk.bf16.vlgmr.msra.gmra.mxu0 %vm61_vm0, %v168_v4 }
  0xce   :  { %v159_v6 = vpop.f32.mrf.mxu0 }
  0xcf   :  { %v111_v7 = vadd.f32 %v159_v6, %v138_v5 }
  0xd0   :  { %v102_v8 = vpop.f32.mrf.mxu0 }
  0xd1   :  { %120 = vst.msk [vmem:[#allocation2 + $0x10] sm:$0xff] %vm117_vm1, %v111_v7  ;;  %v103_v9 = vadd.f32 %v138_v5, %v102_v8 }
  0xd2   :  { %v160_v10 = vpop.f32.mrf.mxu0 }
  0xd3   :  { %118 = vst.msk [vmem:[#allocation2] sm:$0xff] %vm117_vm1, %v103_v9  ;;  %v114_v11 = vadd.f32 %v160_v10, %v138_v5 }
  0xd4   :  { %v105_v12 = vpop.f32.mrf.mxu0 }
  0xd5   :  { %121 = vst.msk [vmem:[#allocation2 + $0x18] sm:$0xff] %vm117_vm1, %v114_v11  ;;  %v106_v13 = vadd.f32 %v138_v5, %v105_v12 }
  0xd7   :  { %119 = vst.msk [vmem:[#allocation2 + $0x8] sm:$0xff] %vm117_vm1, %v106_v13 }
  0xd8   :  { %180 = shalt.err (!%p177_p4)
}
  0xd9   :  { %s192_s2 = smov 128   ;;  %s193_s25 = smov 8  }
  0xda   :  { %133 = dma.vmem_to_hbm [thread:$0]  %s128_s24, 512, %s238_s3, [#allocation3], %s192_s2, %s192_s2, %s193_s25  }
  0xdb   :  { %189 = dma.done.wait [#allocation3], 512  }
  0xdc   :  { %190 = vsyncadd [#allocation3], 4294966784 }
  0xdd   :  { %137 = vsyncpa [#allocation3], 1 }

</bundles_post_ra>
